<compile_context>
chip_gen: v5e
topology: v5e:2x2
jax: 0.10.0
libtpu: 0.0.40
codegen_flags: <defaults>
</compile_context>

<pallas_src>
import jax
import jax.numpy as jnp
from jax.experimental import pallas as pl
from jax.experimental.pallas import tpu as pltpu


def _warmup_kernel(x_ref, w_ref, shift_ref, o_ref):
    # x_ref:     (Cin,  TS)  tile of flattened (padded) spatial positions
    # w_ref:     (Cout, Cin) conv weight with BN scale pre-folded
    # shift_ref: (Cout, 1)   fused BN shift (beta - mean * gamma / sqrt(var+eps))
    # o_ref:     (Cout, TS)
    y = jnp.dot(w_ref[...], x_ref[...], preferred_element_type=jnp.float32)
    y = y + shift_ref[...]                       # batchnorm shift (scale folded into w)
    o_ref[...] = jnp.maximum(y, 0.0).astype(o_ref.dtype)   # relu


def warmupblock_forward(x_nchw, conv_w, bn_gamma, bn_beta, bn_mean, bn_var,
                        *, eps=1e-5, spatial_tile=8192):
    """x_nchw: (N, Cin, H, W) float32.  conv_w: (Cout, Cin, 1, 1).
    Returns (N, Cout, H+2, W+2) float32 (NCHW), matching PyTorch."""
    N, Cin, H, W = x_nchw.shape
    Cout = conv_w.shape[0]
    Hp, Wp = H + 2, W + 2
    S = Hp * Wp

    # padding=1 on a bias-free 1x1 conv: zero-pad the input spatially; the
    # border conv output is exactly 0, so BN+ReLU make it relu(shift[c]).
    x_pad = jnp.pad(x_nchw, ((0, 0), (0, 0), (1, 1), (1, 1)))
    # NCHW stays NCHW; flatten spatial into the (lane) last dim — free reshape.
    x_flat = x_pad.reshape(N, Cin, S).astype(jnp.float32)

    # Fuse BN into weight (scale) + per-channel shift.
    w_mat = conv_w.reshape(Cout, Cin).astype(jnp.float32)
    inv_std = jax.lax.rsqrt(bn_var.astype(jnp.float32) + eps)
    scale = bn_gamma.astype(jnp.float32) * inv_std                    # (Cout,)
    w_scaled = w_mat * scale[:, None]                                 # (Cout, Cin)
    shift = (bn_beta.astype(jnp.float32)
             - bn_mean.astype(jnp.float32) * scale).reshape(Cout, 1)  # (Cout, 1)

    # Spatial tiling: lane-dense, large blocks. If the whole flattened spatial
    # extent fits in one tile, use it exactly (full-dim block is always legal);
    # otherwise use a multiple-of-256 tile and let Pallas mask the trailing
    # partial block (garbage lanes never mix with valid ones: the matmul only
    # contracts over Cin, and out-of-bounds output lanes are masked on store).
    if S <= spatial_tile:
        ts = S
        grid_s = 1
    else:
        ts = spatial_tile
        grid_s = pl.cdiv(S, ts)

    out = pl.pallas_call(
        _warmup_kernel,
        out_shape=jax.ShapeDtypeStruct((N, Cout, S), jnp.float32),
        grid_spec=pltpu.PrefetchScalarGridSpec(
            num_scalar_prefetch=0,
            grid=(N, grid_s),
            in_specs=[
                pl.BlockSpec((None, Cin, ts), lambda n, s: (n, 0, s)),
                pl.BlockSpec((Cout, Cin), lambda n, s: (0, 0)),
                pl.BlockSpec((Cout, 1), lambda n, s: (0, 0)),
            ],
            out_specs=pl.BlockSpec((None, Cout, ts), lambda n, s: (n, 0, s)),
        ),
        compiler_params=pltpu.CompilerParams(
            dimension_semantics=("parallel", "parallel")),
    )(x_flat, w_scaled, shift)

    # (N, Cout, Hp*Wp) -> (N, Cout, Hp, Wp): free reshape, already NCHW.
    return out.reshape(N, Cout, Hp, Wp)


if __name__ == "__main__":
    key = jax.random.PRNGKey(0)
    k_x, k_w, k_g, k_b, k_m, k_v = jax.random.split(key, 6)

    N, Cin, H, W = 2, 4, 16, 16
    Cout = 8

    x = jax.random.normal(k_x, (N, Cin, H, W), dtype=jnp.float32)
    conv_w = jax.random.normal(k_w, (Cout, Cin, 1, 1), dtype=jnp.float32) * 0.1
    bn_gamma = 1.0 + 0.1 * jax.random.normal(k_g, (Cout,), dtype=jnp.float32)
    bn_beta = 0.1 * jax.random.normal(k_b, (Cout,), dtype=jnp.float32)
    bn_mean = 0.05 * jax.random.normal(k_m, (Cout,), dtype=jnp.float32)
    bn_var = jnp.abs(jax.random.normal(k_v, (Cout,), dtype=jnp.float32)) + 0.5

    y = warmupblock_forward(x, conv_w, bn_gamma, bn_beta, bn_mean, bn_var)
    y = jax.block_until_ready(y)

    # reference in plain JAX (eval-mode BN semantics)
    x_pad = jnp.pad(x, ((0, 0), (0, 0), (1, 1), (1, 1)))
    ref = jnp.einsum("nchw,oc->nohw", x_pad, conv_w.reshape(Cout, Cin))
    inv_std = 1.0 / jnp.sqrt(bn_var + 1e-5)
    ref = (ref - bn_mean[None, :, None, None]) * (bn_gamma * inv_std)[None, :, None, None] \
          + bn_beta[None, :, None, None]
    ref = jnp.maximum(ref, 0.0)

    assert y.shape == (N, Cout, H + 2, W + 2)
    assert jnp.allclose(y, ref, atol=1e-4, rtol=1e-4)

    print("KERNEL_OK")
</pallas_src>

<mosaic_0001>
module attributes {stable_mosaic.version = 11 : i64} {
  func.func @_warmup_kernel(%arg0: i32, %arg1: i32, %arg2: memref<1x4x324xf32, #tpu.memory_space<vmem>>, %arg3: memref<8x4xf32, #tpu.memory_space<vmem>>, %arg4: memref<8x1xf32, #tpu.memory_space<vmem>>, %arg5: memref<1x8x324xf32, #tpu.memory_space<vmem>>) attributes {dimension_semantics = [#tpu.dimension_semantics<parallel>, #tpu.dimension_semantics<parallel>], iteration_bounds = array<i64: 2, 1>, scalar_prefetch = 0 : i64, scratch_operands = 0 : i64, tpu.core_type = #tpu.core_type<tc>, window_params = [{transform_indices = @transform_0, window_bounds = array<i64: 1, 4, 324>}, {pipeline_mode = #tpu.pipeline_mode<synchronous>, transform_indices = @transform_1, window_bounds = array<i64: 8, 4>}, {pipeline_mode = #tpu.pipeline_mode<synchronous>, transform_indices = @transform_2, window_bounds = array<i64: 8, 1>}, {transform_indices = @transform_3, window_bounds = array<i64: 1, 8, 324>}]} {
    %c0 = arith.constant 0 : index
    %c0_0 = arith.constant 0 : index
    %0 = vector.load %arg3[%c0, %c0_0] : memref<8x4xf32, #tpu.memory_space<vmem>>, vector<8x4xf32>
    %c0_1 = arith.constant 0 : index
    %c0_2 = arith.constant 0 : index
    %c0_3 = arith.constant 0 : index
    %1 = vector.load %arg2[%c0_1, %c0_2, %c0_3] : memref<1x4x324xf32, #tpu.memory_space<vmem>>, vector<1x4x324xf32>
    %2 = vector.shape_cast %1 : vector<1x4x324xf32> to vector<4x324xf32>
    %cst = arith.constant dense<0.000000e+00> : vector<8x324xf32>
    %3 = tpu.matmul %0, %2, %cst {dimension_numbers = #tpu.dot_dimension_numbers<[1], [0], [0], [1], [0, 0, 1, 1], [], []>} : vector<8x4xf32>, vector<4x324xf32>, vector<8x324xf32> -> vector<8x324xf32>
    %c0_4 = arith.constant 0 : index
    %c0_5 = arith.constant 0 : index
    %4 = vector.load %arg4[%c0_4, %c0_5] : memref<8x1xf32, #tpu.memory_space<vmem>>, vector<8x1xf32>
    %5 = vector.broadcast %4 : vector<8x1xf32> to vector<8x324xf32>
    %6 = arith.addf %3, %5 : vector<8x324xf32>
    %cst_6 = arith.constant 0.000000e+00 : f32
    %7 = vector.broadcast %cst_6 : f32 to vector<8x324xf32>
    %8 = arith.maximumf %6, %7 : vector<8x324xf32>
    %c0_7 = arith.constant 0 : index
    %c0_8 = arith.constant 0 : index
    %c0_9 = arith.constant 0 : index
    %9 = vector.load %arg5[%c0_7, %c0_8, %c0_9] : memref<1x8x324xf32, #tpu.memory_space<vmem>>, vector<1x8x324xf32>
    %10 = vector.shape_cast %9 : vector<1x8x324xf32> to vector<8x324xf32>
    %11 = vector.shape_cast %8 : vector<8x324xf32> to vector<1x8x324xf32>
    tpu.vector_store %arg5[%c0_7, %c0_8, %c0_9], %11 {strides = array<i32>} : memref<1x8x324xf32, #tpu.memory_space<vmem>>, vector<1x8x324xf32>,
    return
  }
  func.func @transform_0(%arg0: i32, %arg1: i32) -> (i32, i32, i32) {
    %c0_i32 = arith.constant 0 : i32
    %c0_i32_0 = arith.constant 0 : i32
    return %arg0, %c0_i32, %arg1 : i32, i32, i32
  }
  func.func @transform_1(%arg0: i32, %arg1: i32) -> (i32, i32) {
    %c0_i32 = arith.constant 0 : i32
    %c0_i32_0 = arith.constant 0 : i32
    %c0_i32_1 = arith.constant 0 : i32
    return %c0_i32, %c0_i32_0 : i32, i32
  }
  func.func @transform_2(%arg0: i32, %arg1: i32) -> (i32, i32) {
    %c0_i32 = arith.constant 0 : i32
    %c0_i32_0 = arith.constant 0 : i32
    %c0_i32_1 = arith.constant 0 : i32
    return %c0_i32, %c0_i32_0 : i32, i32
  }
  func.func @transform_3(%arg0: i32, %arg1: i32) -> (i32, i32, i32) {
    %c0_i32 = arith.constant 0 : i32
    %c0_i32_0 = arith.constant 0 : i32
    return %arg0, %c0_i32, %arg1 : i32, i32, i32
  }
}

</mosaic_0001>

<bundles_post_ra>
// kernel: tpu_custom_call.1
= control target key start
LH: loop header
LB: loop body
LE: loop exit
PB: predicated region body
PF: predicated region fallthrough
CT: control target
= control target key end

     0   :  { %8 = vsyncpa [#allocation3], 0  ;;  %s753_s0 = inlined_call_operand.hbm [shape: f32[2,4,324], index: 0, kind: input, shape index: {}]   ;;  %s754_s1 = inlined_call_operand.vmem [shape: f32[8,4], index: 1, kind: input, shape index: {}]   ;;  %s755_s2 = inlined_call_operand.vmem [shape: f32[8,1], index: 2, kind: input, shape index: {}]   ;;  %s756_s3 = inlined_call_operand.hbm [shape: f32[2,8,324], index: 3, kind: output, shape index: {}]  }
   0x1   :  { %10 = vsyncpa [#allocation3 + $0x1], 0 }
   0x2   :  { %11 = vsyncpa [#allocation4], 0 }
   0x3   :  { %13 = vsyncpa [#allocation4 + $0x1], 0  ;;  %s626_s12 = smov 0   ;;  %s628_s13 = smov 0  }
   0x4   :  { %s630_s14 = smov 0   ;;  %s632_s15 = smov 0  }
   0x5   :  { %s634_s16 = smov 0   ;;  %s636_s17 = smov 0  }
   0x6 LB: > { %s407_s18 = sadd.s32 4294967295, %s603_s17   ;;  %s408_s19 = sadd.s32 4294967294, %s603_s17   ;;  %s603_s17 = sphi %s636_s17, %s19_s17   ;;  %s599_s16 = sphi %s634_s16, %s765_s16   ;;  %s595_s15 = sphi %s632_s15, %s764_s15   ;;  %s591_s14 = sphi %s630_s14, %s763_s14   ;;  %s587_s13 = sphi %s628_s13, %s762_s13   ;;  %s583_s12 = sphi %s626_s12, %s761_s12  }
   0x7   : > { %s31_s20 = sadd.s32 1, %s599_s16  ;;  %s40_s21 = sadd.s32 1, %s591_s14 }
   0x8   : > { %p33_p0 = scmp.ge.s32.totalorder %s31_s20, 2  ;;  %p47_p1 = scmp.ne.s32.totalorder %s591_s14, %s587_s13 }
   0x9   : > { %p48_p2 = scmp.eq.s32.totalorder %s603_s17, 0  ;;  %p53_p3 = scmp.ne.s32.totalorder %s587_s13, %s583_s12 }
   0xa   : > { %s767_s20 = smov (%p33_p0, %s31_s20), 0  ;;  %p54_p5 = scmp.eq.s32.totalorder %s407_s18, 0 }
   0xb   : > { %p667_p4 = por %p48_p2, %p47_p1  ;;  %s35_s23 = ssub.s32 %s599_s16, %s767_s20 }
   0xc   : > { %p121_p6 = scmp.eq.s32.totalorder %s407_s18, 1  ;;  %p38_p7 = scmp.eq.s32.totalorder %s35_s23, 0 }
   0xd   : > { %p673_p8 = por %p54_p5, %p53_p3  ;;  %p127_p10 = scmp.eq.s32.totalorder %s408_s19, 1 }
   0xe   : > { %p677_p9 = por %p121_p6, %p47_p1  ;;  %p410_p12 = scmp.ge.s32.totalorder %s603_s17, 2 }
   0xf   : > { %s682_s26 = scalar_select %p38_p7, %s591_s14, %s40_s21  }
  0x10   : > { %p684_p11 = por %p127_p10, %p53_p3  ;;  %p439_p13 = scmp.lt.s32.totalorder %s603_s17, 2 }
  0x11   : > { %s153_s28 = sand.u32 1, %s591_s14   ;;  %s423_s30 = smul.u32 12, %s599_s16 }
  0x12   : > { %s422_s29 = smul.u32 12, %s153_s28  ;;  %p432_p0 = pnand %p439_p13, %p667_p4 }
  0x13   : > { %p412_p2 = scmp.ge.s32.totalorder %s603_s17, 1  ;;  %s164_s6 = scalar_lea.hbm %s753_s0, %s423_s30 }
  0x14   : > { %s157_s7 = scalar_lea.vmem [#allocation2], %s422_s29  ;;  %s166_s9 = sshll.u32 %s164_s6, 4  ;;  %s167_s9 = int_to_ptr.hbm [resolvable:$true] %s166_s9 }
  0x15   : > { %s168_s8 = sshll.u32 %s157_s7, 4  ;;  %s154_s10 = scalar_lea.sflag [#allocation3], %s153_s28  ;;  %s169_s8 = int_to_ptr.vmem [resolvable:$true] %s168_s8 }
  0x16   : > { %434 = dma.hbm_to_vmem [thread:$0]  (!%p432_p0), %s167_s9, 192, %s169_s8, %s154_s10  }
  0x17   : > { %p173_p1 = scmp.lt.s32.totalorder %s603_s17, 3 }
  0x19   : > { %p174_p3 = pnand %p412_p2, %p173_p1 }
  0x1a   : > { %s700_s11 = sand.u32 (!%p174_p3), 1, %s587_s13  }
  0x1b   : > { %177 = sbr.rel (%p174_p3) target bundleno = 182 (0xb6), region = 32  ;;  %s180_s19 = scalar_lea.sflag (!%p174_p3), [#allocation3], %s700_s11 }
  0x1c   : > { %s424_s18 = smul.u32 (!%p174_p3), 12, %s700_s11 }
  0x1e   : > { %s183_s21 = scalar_lea.vmem (!%p174_p3), [#allocation2], %s424_s18 }
  0x20   : > { %574 = dma.done.wait (%p673_p8), %s180_s19, 192  }
  0x21   : > { %576 = vsyncadd (%p673_p8), %s180_s19, 4294967104  ;;  %v605_v0 = vmov 0   ;;  %v211_v1 = vld [vmem:[%s183_s21 + $0x8] sm:$0xf]  ;;  %v210_v2 = vld [vmem:[%s183_s21] sm:$0xff]  ;;  %vm230_vm0 = vcmask 1043456  }
  0x22   : > { %490 = vset.pattern.permute.xlu0 %v605_v0  ;;  %222 = vst [vmem:[#allocation1 + $0x10] ss:$2 sm:$0xff] %v211_v1  ;;  %v212_v3 = vld [vmem:[%s755_s2] sm:$0xff]  ;;  %vm226_vm1 = vcmask 31744   ;;  %s425_s24 = smul.u32 24, %s700_s11  ;;  %vm302_vm2 = vcmask 556032  }
  0x23   : > { %220 = vst [vmem:[#allocation1] ss:$2 sm:$0xff] %v210_v2  ;;  %215 = vperm.xlu0 %490, %v212_v3   ;;  %v209_v4 = vld [vmem:[%s754_s1] sm:$0xff]  ;;  %s426_s30 = smul.u32 24, %s595_s15  ;;  %s305_s15 = scalar_lea.sflag [#allocation4], %s700_s11 }
  0x24   : > { %s206_s7 = scalar_lea.vmem [#allocation5], %s425_s24  ;;  %s541_s22 = scalar_lea.hbm %s756_s3, 48 }
  0x25   : > { %s318_s6 = scalar_lea.hbm %s756_s3, %s426_s30  ;;  %s320_s8 = sshll.u32 %s206_s7, 4  ;;  %s321_s8 = int_to_ptr.vmem [resolvable:$true] %s320_s8 }
  0x26   : > { %s322_s9 = sshll.u32 %s318_s6, 4  ;;  %s323_s9 = int_to_ptr.hbm [resolvable:$true] %s322_s9 }
  0x27   : > { %s535_s10 = sshra.s32 %s323_s9, 4  ;;  %s536_s10 = int_to_ptr.hbm [resolvable:$true] %s535_s10 }
  0x28   : > { %s537_s18 = scalar_lea.hbm %s536_s10, 24  ;;  %p542_p7 = scmp.lt.s32.totalorder %s536_s10, %s756_s3 }
  0x29   : > { %v225_v5 = vld.sshfl [vmem:[#allocation1 + $0x10] sm:$0xff pattern:$0x75316420]  ;;  %p538_p4 = scmp.ne.s32.totalorder %s536_s10, %s537_s18  ;;  %p543_p8 = scmp.lt.s32.totalorder %s541_s22, %s537_s18 }
  0x2a   : > { %417 = vmatpush.msk.msra.mxu2 %vm230_vm0, %v225_v5  ;;  %v223_v6 = vld.sshfl [vmem:[#allocation1] sm:$0xff pattern:$0x75316420]  ;;  %v224_v7 = vld.sshfl [vmem:[#allocation1 + $0x8] sm:$0xff pattern:$0x75316420] }
  0x2b   : > { %418 = vmatmul.msk.f32.vlgmr.msra.gmra.mxu2 %vm226_vm1, %v209_v4  ;;  %413 = vmatpush.msk.msra.mxu0 %vm230_vm0, %v223_v6  ;;  %p539_p5 = pnand %p538_p4, %p677_p9  ;;  %p544_p10 = por %p543_p8, %p542_p7 }
  0x2c   : > { %415 = vmatpush.msk.msra.mxu1 %vm230_vm0, %v224_v7  ;;  %414 = vmatmul.msk.f32.vlgmr.msra.gmra.mxu0 %vm226_vm1, %v209_v4 }
  0x2d   : > { %416 = vmatmul.msk.f32.vlgmr.msra.gmra.mxu1 %vm226_vm1, %v209_v4  ;;  %p540_p6 = pneg %p539_p5 }
  0x2f   : > { %p545_p13 = pnand %p544_p10, %p540_p6 }
  0x95   : > { %v216_v8 = vpop.permute.xlu0 %215 }
  0xa9   : > { %v254_v9 = vpop.f32.mrf.mxu0 }
  0xaa   : > { %v255_v10 = vadd.f32 %v254_v9, %v216_v8  ;;  %v274_v11 = vpop.f32.mrf.mxu1 }
  0xab   : > { %v275_v12 = vadd.f32 %v274_v11, %v216_v8 }
  0xac   : > { %v297_v13 = vmax.f32 %v255_v10, 0.0 }
  0xad   : > { %v298_v14 = vmax.f32 %v275_v12, 0.0 }
  0xae   : > { %300 = vst [vmem:[%s206_s7] sm:$0xff] %v297_v13  ;;  %v294_v15 = vpop.f32.mrf.mxu2 }
  0xaf   : > { %301 = vst [vmem:[%s206_s7 + $0x8] sm:$0xff] %v298_v14  ;;  %v295_v16 = vadd.f32 %v294_v15, %v216_v8 }
  0xb1   : > { %v299_v17 = vmax.f32 %v295_v16, 0.0 }
  0xb3   : > { %303 = vst.msk [vmem:[%s206_s7 + $0x10] sm:$0xff] %vm302_vm2, %v299_v17 }
  0xb4   : > { %548 = shalt.err (!%p545_p13)
}
  0xb5   : > { %429 = dma.vmem_to_hbm [thread:$0]  (%p677_p9), %s321_s8, 384, %s323_s9, %s305_s15  }
  0xb6 PF: > { %s334_s11 = sand.u32 1, %s583_s12   ;;  %p436_p0 = pnand %p410_p12, %p684_p11 }
  0xb7   : > { %s335_s29 = scalar_lea.sflag [#allocation4], %s334_s11 }
  0xb8   : > { %p437_p2 = pneg %p436_p0 }
  0xba   : > { %578 = dma.done.wait (%p437_p2), %s335_s29, 384  }
  0xbb   : > { %580 = vsyncadd (%p437_p2), %s335_s29, 4294966912  ;;  %s19_s17 = sadd.s32 1, %s603_s17   ;;  %s761_s12 = smov %s587_s13 }
  0xbc   : > { %p16_p1 = scmp.ge.s32.totalorder %s19_s17, 4   ;;  %s762_s13 = smov %s591_s14 }
  0xbd   : > { %s763_s14 = smov %s682_s26  ;;  %s764_s15 = smov %s599_s16 }
  0xbe   : > { %s765_s16 = smov %s767_s20  ;;  %18 = sbr.rel (!%p16_p1) target bundleno = 6 (0x6), region = 78 }
  0xc3   :  { %341 = vsyncpa [#allocation3], 1 }
  0xc4   :  { %343 = vsyncpa [#allocation3 + $0x1], 1 }
  0xc5   :  { %344 = vsyncpa [#allocation4], 1 }
  0xc6   :  { %346 = vsyncpa [#allocation4 + $0x1], 1 }

</bundles_post_ra>
